<compile_context>
chip_gen: v7x
topology: tpu7x:2x2x1
jax: 0.10.0
libtpu: 0.0.40
codegen_flags: <defaults>
</compile_context>

<pallas_src>
import jax
import jax.numpy as jnp
from jax import lax
from jax.experimental import pallas as pl
from jax.experimental.pallas import tpu as pltpu


_LANE = 128                            # TPU lane width
_K_TILE_MAX = 512                      # max contraction tile
_TM_MAX = 512                          # max row tile
_VMEM_TILE_BUDGET = 32 * 1024 * 1024   # target working-set (safe on v5e/v6e/v7x)
_VMEM_LIMIT_BYTES = 48 * 1024 * 1024   # explicit scoped-VMEM limit (headroom kept)
_SMALL_PROBLEM_FLOPS = 1 << 18         # below this, XLA's fused path wins


def _round_up(x, m):
    return (x + m - 1) // m * m


def _value_kernel(x_ref, w_ref, o_ref, acc_ref):
    """One (TM, TK) activation tile against the resident (N, TK) weight tile.

    x_ref  : (TM, TK)       activation tile
    w_ref  : (N,  TK)       weight in native nn.Linear (dim_val, dim_input) layout
    o_ref  : (TM, N)        output tile (lane-dense N)
    acc_ref: (TM, N) f32    accumulator carried across the K grid axis
    """
    @pl.when(pl.program_id(1) == 0)
    def _():
        acc_ref[...] = jnp.zeros_like(acc_ref)

    # x @ W.T : contract last dim of x with last dim of W (native layout).
    acc_ref[...] += lax.dot_general(
        x_ref[...],
        w_ref[...],
        dimension_numbers=(((1,), (1,)), ((), ())),
        preferred_element_type=jnp.float32,
    )

    @pl.when(pl.program_id(1) == pl.num_programs(1) - 1)
    def _():
        o_ref[...] = acc_ref[...].astype(o_ref.dtype)


def value_forward(x, weight, *, force_pallas=False):
    """Pallas equivalent of nn.Linear(dim_input, dim_val, bias=False)(x).

    x:      (..., dim_input)
    weight: (dim_val, dim_input)   -- PyTorch nn.Linear weight layout
    returns (..., dim_val)
    """
    dim_val, dim_input = weight.shape
    lead_shape = x.shape[:-1]
    M = 1
    for d in lead_shape:
        M *= d

    # Tiny problems: a few-hundred-FLOP matmul is dominated by launch / DMA
    # overhead -> defer to XLA unless the caller forces the Pallas path.
    if not force_pallas and (2 * M * dim_input * dim_val) < _SMALL_PROBLEM_FLOPS:
        return jnp.einsum("...i,vi->...v", x, weight).astype(x.dtype)

    x2d = x.reshape(M, dim_input)

    # --- K (contraction) tiling -------------------------------------------
    if dim_input <= _K_TILE_MAX:
        tk = dim_input
        k_pad = dim_input
    else:
        tk = _K_TILE_MAX
        k_pad = _round_up(dim_input, tk)
    if k_pad != dim_input:
        # Zero-pad K so partial contraction tiles contribute exactly zero.
        x2d = jnp.pad(x2d, ((0, 0), (0, k_pad - dim_input)))
        weight = jnp.pad(weight, ((0, 0), (0, k_pad - dim_input)))

    # --- Lane-dense output: pad N (dim_val) up to a multiple of 128 --------
    n_pad = _round_up(dim_val, _LANE)
    w_p = weight if n_pad == dim_val else jnp.pad(
        weight, ((0, n_pad - dim_val), (0, 0)))
    # TODO(synk): for production, fuse sibling projections (Q/K/V heads) so N
    # is naturally >=128 instead of padding a lone 32-wide projection.

    # --- M tile: biggest tile that fits the VMEM budget ---------------------
    xb = x2d.dtype.itemsize
    wb = w_p.dtype.itemsize
    ob = x.dtype.itemsize

    def _vmem_usage(tm):
        return (2 * tm * tk * xb          # double-buffered x tiles
                + 2 * n_pad * tk * wb     # weight tile (conservative 2x)
                + 2 * tm * n_pad * ob     # double-buffered output tiles
                + tm * n_pad * 4)         # fp32 accumulator scratch

    if M <= _TM_MAX:
        tm = M                            # single full-extent row block
    else:
        tm = _TM_MAX
        while tm > 8 and _vmem_usage(tm) > _VMEM_TILE_BUDGET:
            tm //= 2

    grid = (pl.cdiv(M, tm), k_pad // tk)

    out2d = pl.pallas_call(
        _value_kernel,
        out_shape=jax.ShapeDtypeStruct((M, n_pad), x.dtype),
        grid=grid,
        in_specs=[
            # Activation: new row tile per i, new K slice per k.
            pl.BlockSpec((tm, tk), lambda i, k: (i, k)),
            # Weight: constant across i (stays VMEM-resident), sliced over k.
            pl.BlockSpec((n_pad, tk), lambda i, k: (0, k)),
        ],
        out_specs=pl.BlockSpec((tm, n_pad), lambda i, k: (i, 0)),
        scratch_shapes=[pltpu.VMEM((tm, n_pad), jnp.float32)],
        compiler_params=pltpu.CompilerParams(
            dimension_semantics=("parallel", "arbitrary"),
            vmem_limit_bytes=_VMEM_LIMIT_BYTES,
        ),
    )(x2d, w_p)

    if n_pad != dim_val:
        out2d = out2d[:, :dim_val]
    return out2d.reshape(*lead_shape, dim_val)


if __name__ == "__main__":
    # Small shapes consistent with the module's forward:
    #   x: (batch=2, seq=8, dim_input=32) -> out: (2, 8, dim_val=32)
    dim_input = 32
    dim_val = 32
    batch, seq = 2, 8

    key = jax.random.PRNGKey(0)
    kx, kw = jax.random.split(key)

    x = jax.random.normal(kx, (batch, seq, dim_input), dtype=jnp.float32)
    # Deterministic synthetic weight (mimics nn.Linear's (dim_val, dim_input) shape).
    bound = 1.0 / (dim_input ** 0.5)
    weight = jax.random.uniform(
        kw, (dim_val, dim_input), dtype=jnp.float32, minval=-bound, maxval=bound
    )

    ref = jnp.einsum("bsi,vi->bsv", x, weight)

    # Force the Pallas path at these toy sizes so the kernel is exercised.
    out = value_forward(x, weight, force_pallas=True)
    out = jax.block_until_ready(out)
    assert out.shape == (batch, seq, dim_val)
    assert jnp.allclose(out, ref, atol=1e-5, rtol=1e-5)

    # Auto-dispatch path (falls back to XLA for this tiny problem) must match too.
    out_auto = jax.block_until_ready(value_forward(x, weight))
    assert jnp.allclose(out_auto, ref, atol=1e-5, rtol=1e-5)

    print("KERNEL_OK")
</pallas_src>

<mosaic_0001>
module attributes {stable_mosaic.version = 11 : i64} {
  func.func @_value_kernel(%arg0: i32, %arg1: i32, %arg2: memref<16x32xf32, #tpu.memory_space<vmem>>, %arg3: memref<128x32xf32, #tpu.memory_space<vmem>>, %arg4: memref<16x128xf32, #tpu.memory_space<vmem>>, %arg5: memref<16x128xf32, #tpu.memory_space<vmem>>) attributes {dimension_semantics = [#tpu.dimension_semantics<parallel>, #tpu.dimension_semantics<arbitrary>], iteration_bounds = array<i64: 1, 1>, scalar_prefetch = 0 : i64, scratch_operands = 1 : i64, tpu.core_type = #tpu.core_type<tc>, window_params = [{transform_indices = @transform_0, window_bounds = array<i64: 16, 32>}, {transform_indices = @transform_1, window_bounds = array<i64: 128, 32>}, {transform_indices = @transform_2, window_bounds = array<i64: 16, 128>}]} {
    %c0_i32 = arith.constant 0 : i32
    %0 = arith.cmpi eq, %arg1, %c0_i32 : i32
    %1 = arith.extui %0 : i1 to i32
    %c0_i32_0 = arith.constant 0 : i32
    %2 = arith.cmpi ne, %1, %c0_i32_0 : i32
    scf.if %2 {
      %cst_10 = arith.constant 0.000000e+00 : f32
      %12 = vector.broadcast %cst_10 : f32 to vector<16x128xf32>
      %c0_11 = arith.constant 0 : index
      %c0_12 = arith.constant 0 : index
      %13 = vector.load %arg5[%c0_11, %c0_12] : memref<16x128xf32, #tpu.memory_space<vmem>>, vector<16x128xf32>
      tpu.vector_store %arg5[%c0_11, %c0_12], %12 {strides = array<i32>} : memref<16x128xf32, #tpu.memory_space<vmem>>, vector<16x128xf32>,
    } else {
    }
    %c0 = arith.constant 0 : index
    %c0_1 = arith.constant 0 : index
    %3 = vector.load %arg5[%c0, %c0_1] : memref<16x128xf32, #tpu.memory_space<vmem>>, vector<16x128xf32>
    %c0_2 = arith.constant 0 : index
    %c0_3 = arith.constant 0 : index
    %4 = vector.load %arg2[%c0_2, %c0_3] : memref<16x32xf32, #tpu.memory_space<vmem>>, vector<16x32xf32>
    %c0_4 = arith.constant 0 : index
    %c0_5 = arith.constant 0 : index
    %5 = vector.load %arg3[%c0_4, %c0_5] : memref<128x32xf32, #tpu.memory_space<vmem>>, vector<128x32xf32>
    %cst = arith.constant dense<0.000000e+00> : vector<16x128xf32>
    %6 = tpu.matmul %4, %5, %cst {dimension_numbers = #tpu.dot_dimension_numbers<[1], [1], [0], [0], [0, 0, 1, 0], [], []>} : vector<16x32xf32>, vector<128x32xf32>, vector<16x128xf32> -> vector<16x128xf32>
    %7 = arith.addf %3, %6 : vector<16x128xf32>
    %c0_6 = arith.constant 0 : index
    %c0_7 = arith.constant 0 : index
    %8 = vector.load %arg5[%c0_6, %c0_7] : memref<16x128xf32, #tpu.memory_space<vmem>>, vector<16x128xf32>
    tpu.vector_store %arg5[%c0_6, %c0_7], %7 {strides = array<i32>} : memref<16x128xf32, #tpu.memory_space<vmem>>, vector<16x128xf32>,
    %c0_i32_8 = arith.constant 0 : i32
    %9 = arith.cmpi eq, %arg1, %c0_i32_8 : i32
    %10 = arith.extui %9 : i1 to i32
    %c0_i32_9 = arith.constant 0 : i32
    %11 = arith.cmpi ne, %10, %c0_i32_9 : i32
    scf.if %11 {
      %c0_10 = arith.constant 0 : index
      %c0_11 = arith.constant 0 : index
      %12 = vector.load %arg5[%c0_10, %c0_11] : memref<16x128xf32, #tpu.memory_space<vmem>>, vector<16x128xf32>
      %c0_12 = arith.constant 0 : index
      %c0_13 = arith.constant 0 : index
      %13 = vector.load %arg4[%c0_12, %c0_13] : memref<16x128xf32, #tpu.memory_space<vmem>>, vector<16x128xf32>
      tpu.vector_store %arg4[%c0_12, %c0_13], %12 {strides = array<i32>} : memref<16x128xf32, #tpu.memory_space<vmem>>, vector<16x128xf32>,
    } else {
    }
    return
  }
  func.func @transform_0(%arg0: i32, %arg1: i32) -> (i32, i32) {
    %c0_i32 = arith.constant 0 : i32
    return %arg0, %arg1 : i32, i32
  }
  func.func @transform_1(%arg0: i32, %arg1: i32) -> (i32, i32) {
    %c0_i32 = arith.constant 0 : i32
    %c0_i32_0 = arith.constant 0 : i32
    return %c0_i32, %arg1 : i32, i32
  }
  func.func @transform_2(%arg0: i32, %arg1: i32) -> (i32, i32) {
    %c0_i32 = arith.constant 0 : i32
    %c0_i32_0 = arith.constant 0 : i32
    return %arg0, %c0_i32 : i32, i32
  }
}

</mosaic_0001>

<bundles_post_ra>
// kernel: tpu_custom_call.1
= control target key start
LH: loop header
LB: loop body
LE: loop exit
PB: predicated region body
PF: predicated region fallthrough
CT: control target
= control target key end

     0   :  { %vm38_vm0 = vcmask 261120   ;;  %s465_s0 = inlined_call_operand.vmem [shape: f32[16,32], index: 0, kind: input, shape index: {}]   ;;  %s466_s1 = inlined_call_operand.vmem [shape: f32[128,32], index: 1, kind: input, shape index: {}]   ;;  %s467_s2 = inlined_call_operand.hbm [shape: f32[16,128], index: 2, kind: output, shape index: {}]  }
   0x1   :  { %v22_v0 = vld [vmem:[%s466_s1] sm:$0xff]  ;;  %v23_v1 = vld [vmem:[%s466_s1 + $0x8] sm:$0xff]  ;;  %v24_v2 = vld [vmem:[%s466_s1 + $0x10] sm:$0xff] }
   0x2   :  { %v266_v3 = vpack.c.bf16 %v23_v1, %v22_v0  ;;  %vm370_vm1 = vmpackc.low %vm38_vm0, %vm38_vm0  ;;  %v25_v5 = vld [vmem:[%s466_s1 + $0x18] sm:$0xff]  ;;  %v20_v7 = vld [vmem:[%s465_s0] sm:$0xff] }
   0x3   :  { %v272_v6 = vpack.c.bf16 %v25_v5, %v24_v2  ;;  %v26_v8 = vld [vmem:[%s466_s1 + $0x20] sm:$0xff]  ;;  %v27_v9 = vld [vmem:[%s466_s1 + $0x28] sm:$0xff]  ;;  %263 = vmatprep.mubr.msk.f32.mxu0 %vm38_vm0, %v20_v7 }
   0x4   :  { %268 = vmatprep.subr.msk.bf16.mxu0 %vm370_vm1, %v266_v3 }
   0x5   :  { %271 = vmatpush3.bf16.xpose.msk.msra.mxu0 %vm370_vm1, %v266_v3 }
   0x6   :  { %274 = vmatprep.subr.msk.bf16.mxu0 %vm370_vm1, %v272_v6 }
   0x7   :  { %7 = vsyncpa [#allocation4], 0  ;;  %v278_v10 = vpack.c.bf16 %v27_v9, %v26_v8  ;;  %v28_v11 = vld [vmem:[%s466_s1 + $0x30] sm:$0xff]  ;;  %v29_v12 = vld [vmem:[%s466_s1 + $0x38] sm:$0xff]  ;;  %s341_s17 = smov [#allocation3]  }
   0x8   :  { %v284_v13 = vpack.c.bf16 %v29_v12, %v28_v11  ;;  %v30_v14 = vld [vmem:[%s466_s1 + $0x40] sm:$0xff]  ;;  %v31_v15 = vld [vmem:[%s466_s1 + $0x48] sm:$0xff]  ;;  %v32_v17 = vld [vmem:[%s466_s1 + $0x50] sm:$0xff]  ;;  %s184_s18 = sshll.u32 %s341_s17, 4  ;;  %s185_s18 = int_to_ptr.vmem [resolvable:$true] %s184_s18 }
   0x9   :  { %v290_v16 = vpack.c.bf16 %v31_v15, %v30_v14  ;;  %v33_v18 = vld [vmem:[%s466_s1 + $0x58] sm:$0xff]  ;;  %v34_v20 = vld [vmem:[%s466_s1 + $0x60] sm:$0xff]  ;;  %v35_v21 = vld [vmem:[%s466_s1 + $0x68] sm:$0xff]  ;;  %p322_p1 = scmp.lt.s32.totalorder %s185_s18, %s185_s18 }
   0xa   :  { %v296_v19 = vpack.c.bf16 %v33_v18, %v32_v17  ;;  %v302_v22 = vpack.c.bf16 %v35_v21, %v34_v20  ;;  %v36_v23 = vld [vmem:[%s466_s1 + $0x70] sm:$0xff]  ;;  %v37_v24 = vld [vmem:[%s466_s1 + $0x78] sm:$0xff]  ;;  %v21_v26 = vld [vmem:[%s465_s0 + $0x8] sm:$0xff]  ;;  %s317_s1 = scalar_lea.vmem %s185_s18, 256 }
   0xb   :  { %v308_v25 = vpack.c.bf16 %v37_v24, %v36_v23  ;;  %p318_p0 = scmp.ne.s32.totalorder %s185_s18, %s317_s1  ;;  %p323_p2 = scmp.lt.s32.totalorder %s317_s1, %s317_s1 }
   0xd   :  { %277 = vmatpush3.bf16.xpose.msk.msra.mxu0 %vm370_vm1, %v272_v6  ;;  %p324_p3 = por %p323_p2, %p322_p1 }
   0xe   :  { %280 = vmatprep.subr.msk.bf16.mxu0 %vm370_vm1, %v278_v10 }
   0xf   :  { %p325_p4 = pnand %p324_p3, %p318_p0 }
  0x15   :  { %283 = vmatpush3.bf16.xpose.msk.msra.mxu0 %vm370_vm1, %v278_v10 }
  0x16   :  { %286 = vmatprep.subr.msk.bf16.mxu0 %vm370_vm1, %v284_v13 }
  0x1d   :  { %289 = vmatpush3.bf16.xpose.msk.msra.mxu0 %vm370_vm1, %v284_v13 }
  0x1e   :  { %292 = vmatprep.subr.msk.bf16.mxu0 %vm370_vm1, %v290_v16 }
  0x25   :  { %295 = vmatpush3.bf16.xpose.msk.msra.mxu0 %vm370_vm1, %v290_v16 }
  0x26   :  { %298 = vmatprep.subr.msk.bf16.mxu0 %vm370_vm1, %v296_v19 }
  0x2d   :  { %301 = vmatpush3.bf16.xpose.msk.msra.mxu0 %vm370_vm1, %v296_v19 }
  0x2e   :  { %304 = vmatprep.subr.msk.bf16.mxu0 %vm370_vm1, %v302_v22 }
  0x35   :  { %307 = vmatpush3.bf16.xpose.msk.msra.mxu0 %vm370_vm1, %v302_v22 }
  0x36   :  { %310 = vmatprep.subr.msk.bf16.mxu0 %vm370_vm1, %v308_v25 }
  0x3d   :  { %313 = vmatpush3.bf16.xpose.msk.msra.mxu0 %vm370_vm1, %v308_v25 }
  0x44   :  { %264 = vmatmul.mubr.msk.f32.vlgmr.msra.gmra.mrb[0].mxu0 %vm38_vm0, %v21_v26 }
 0x117   :  { %v265_v27 = vpop.f32.mrb[0].mxu0 }
 0x118   :  { %178 = vst [vmem:[#allocation3 + $0x8] sm:$0xff] %v265_v27  ;;  %v159_v28 = vpop.f32.mrb[1].mxu0 }
 0x119   :  { %177 = vst [vmem:[#allocation3] sm:$0xff] %v159_v28 }
 0x11a   :  { %328 = shalt.err (!%p325_p4)
}
 0x11b   :  { %s329_s0 = scalar_lea.hbm %s467_s2, 256 }
 0x11c   :  { %p330_p5 = scmp.ne.s32.totalorder %s467_s2, %s329_s0  ;;  %p333_p6 = scmp.lt.u32.totalorder %s329_s0, %s467_s2 }
 0x11e   :  { %p335_p7 = pnand %p333_p6, %p330_p5 }
 0x120   :  { %338 = shalt.err (!%p335_p7)
}
 0x121   :  { %s342_s25 = smov 128   ;;  %s343_s26 = smov 8  }
 0x122   :  { %190 = dma.vmem_to_hbm [thread:$0]  %s185_s18, 256, %s467_s2, [#allocation4], %s342_s25, %s342_s25, %s343_s26  }
 0x123   :  { %339 = dma.done.wait [#allocation4], 256  }
 0x124   :  { %340 = vsyncadd [#allocation4], 4294967040 }
 0x125   :  { %194 = vsyncpa [#allocation4], 1 }

</bundles_post_ra>
